<compile_context>
chip_gen: v7x
topology: tpu7x:2x2x1
jax: 0.10.0
libtpu: 0.0.40
codegen_flags: <defaults>
</compile_context>

<pallas_src>
import math

import jax
import jax.numpy as jnp
from jax.experimental import pallas as pl
from jax.experimental.pallas import tpu as pltpu

OUT_PAD = 128  # lane-dense output width; q1 = col 0, q2 = col 1, rest zeros.


# ----------------------------------------------------------------------------
# Kernel: fused twin-Q forward for one batch tile.
# ----------------------------------------------------------------------------
def critic_kernel(obs_ref, act_ref,
                  w1o_ref, w1a_ref, b1_ref,
                  w2_ref, b2_ref,
                  w3_ref, b3_ref,
                  o_ref):
    # Layer 1 (both heads at once), concat folded into two partial matmuls.
    h = (jnp.dot(obs_ref[...], w1o_ref[...], preferred_element_type=jnp.float32)
         + jnp.dot(act_ref[...], w1a_ref[...], preferred_element_type=jnp.float32)
         + b1_ref[...])
    h = jnp.maximum(h, 0.0)

    # Layer 2 (block-diagonal => heads stay independent).
    h = jnp.dot(h, w2_ref[...], preferred_element_type=jnp.float32) + b2_ref[...]
    h = jnp.maximum(h, 0.0)

    # Layer 3 (block-diagonal, zero-padded to OUT_PAD lanes => unmasked store).
    o_ref[...] = (jnp.dot(h, w3_ref[...], preferred_element_type=jnp.float32)
                  + b3_ref[...])


# ----------------------------------------------------------------------------
# Wrapper
# ----------------------------------------------------------------------------
def critic_forward(obs, action, fused):
    """obs: (B, obs_dim+goal_dim), action: (B, action_dim) -> ((B,1), (B,1))."""
    B, obs_feat = obs.shape
    act_feat = action.shape[1]

    # Batch tiling: one tile if small, otherwise 256-row tiles (parallel grid).
    if B <= 256:
        block_b = B
    else:
        assert B % 256 == 0, "batch must be a multiple of 256 when > 256"
        block_b = 256
    grid = (pl.cdiv(B, block_b),)

    resident = lambda shape: pl.BlockSpec(shape, lambda i: (0, 0))

    args = (obs, action,
            fused["w1o"], fused["w1a"], fused["b1"],
            fused["w2"], fused["b2"],
            fused["w3"], fused["b3"])

    in_specs = [
        pl.BlockSpec((block_b, obs_feat), lambda i: (i, 0)),   # obs tile
        pl.BlockSpec((block_b, act_feat), lambda i: (i, 0)),   # action tile
        resident(fused["w1o"].shape),
        resident(fused["w1a"].shape),
        resident(fused["b1"].shape),
        resident(fused["w2"].shape),
        resident(fused["b2"].shape),
        resident(fused["w3"].shape),
        resident(fused["b3"].shape),
    ]

    out = pl.pallas_call(
        critic_kernel,
        out_shape=jax.ShapeDtypeStruct((B, OUT_PAD), jnp.float32),
        grid=grid,
        in_specs=in_specs,
        out_specs=pl.BlockSpec((block_b, OUT_PAD), lambda i: (i, 0)),
        compiler_params=pltpu.CompilerParams(
            dimension_semantics=("parallel",)),
    )(*args)

    return out[:, 0:1], out[:, 1:2]


# ----------------------------------------------------------------------------
# Parameter init (PyTorch nn.Linear default) + head fusion / packing.
# ----------------------------------------------------------------------------
def init_linear(key, in_dim, out_dim):
    kw, kb = jax.random.split(key)
    bound = 1.0 / math.sqrt(in_dim)
    w = jax.random.uniform(kw, (in_dim, out_dim), jnp.float32, -bound, bound)
    b = jax.random.uniform(kb, (1, out_dim), jnp.float32, -bound, bound)
    return w, b


def init_critic_params(key, obs_dim, action_dim, goal_dim,
                       hidden_1=256, hidden_2=256):
    in_dim = obs_dim + goal_dim + action_dim
    keys = jax.random.split(key, 6)
    p = {}
    p["w1"], p["b1"] = init_linear(keys[0], in_dim, hidden_1)
    p["w2"], p["b2"] = init_linear(keys[1], hidden_1, hidden_2)
    p["w3"], p["b3"] = init_linear(keys[2], hidden_2, 1)
    p["w4"], p["b4"] = init_linear(keys[3], in_dim, hidden_1)
    p["w5"], p["b5"] = init_linear(keys[4], hidden_1, hidden_2)
    p["w6"], p["b6"] = init_linear(keys[5], hidden_2, 1)
    return p


def pack_fused_params(p, obs_feat):
    """Fuse the two Q heads into block-diagonal matrices (done once, off-path)."""
    H1 = p["w1"].shape[1]
    H2 = p["w2"].shape[1]

    # Layer 1: side-by-side; split by rows so the kernel skips the concat.
    w1f = jnp.concatenate([p["w1"], p["w4"]], axis=1)            # (in, 2H1)
    w1o = w1f[:obs_feat]                                         # (obs_feat, 2H1)
    w1a = w1f[obs_feat:]                                         # (act_dim, 2H1)
    b1f = jnp.concatenate([p["b1"], p["b4"]], axis=1)            # (1, 2H1)

    # Layer 2: block diagonal keeps the heads independent.
    z2 = jnp.zeros((H1, H2), jnp.float32)
    w2f = jnp.block([[p["w2"], z2], [z2, p["w5"]]])              # (2H1, 2H2)
    b2f = jnp.concatenate([p["b2"], p["b5"]], axis=1)            # (1, 2H2)

    # Layer 3: block diagonal -> (2H2, 2), zero-padded to OUT_PAD lanes.
    z3 = jnp.zeros((H2, 1), jnp.float32)
    w3f = jnp.block([[p["w3"], z3], [z3, p["w6"]]])              # (2H2, 2)
    b3f = jnp.concatenate([p["b3"], p["b6"]], axis=1)            # (1, 2)
    w3f = jnp.pad(w3f, ((0, 0), (0, OUT_PAD - 2)))
    b3f = jnp.pad(b3f, ((0, 0), (0, OUT_PAD - 2)))

    return dict(w1o=w1o, w1a=w1a, b1=b1f, w2=w2f, b2=b2f, w3=w3f, b3=b3f)


# ----------------------------------------------------------------------------
# Pure-JAX reference of the PyTorch forward (unfused).
# ----------------------------------------------------------------------------
def critic_ref(obs, action, p):
    x = jnp.concatenate([obs, action], axis=-1)
    h = jax.nn.relu(x @ p["w1"] + p["b1"])
    h = jax.nn.relu(h @ p["w2"] + p["b2"])
    q1 = h @ p["w3"] + p["b3"]
    g = jax.nn.relu(x @ p["w4"] + p["b4"])
    g = jax.nn.relu(g @ p["w5"] + p["b5"])
    q2 = g @ p["w6"] + p["b6"]
    return q1, q2


if __name__ == "__main__":
    # Small deterministic problem; batch bumped to 128 so the M dim fills an
    # MXU tile (per perf review) while everything stays tiny in VMEM.
    obs_dim, goal_dim, action_dim = 12, 4, 4
    hidden_1 = hidden_2 = 32
    batch = 128

    key = jax.random.PRNGKey(0)
    k_params, k_obs, k_act = jax.random.split(key, 3)

    params = init_critic_params(k_params, obs_dim, action_dim, goal_dim,
                                hidden_1, hidden_2)
    fused = pack_fused_params(params, obs_feat=obs_dim + goal_dim)

    obs = jax.random.normal(k_obs, (batch, obs_dim + goal_dim), jnp.float32)
    action = jax.random.normal(k_act, (batch, action_dim), jnp.float32)

    q1, q2 = critic_forward(obs, action, fused)
    q1 = jax.block_until_ready(q1)
    q2 = jax.block_until_ready(q2)

    # Sanity check against the unfused pure-JAX reference.
    r1, r2 = critic_ref(obs, action, params)
    assert q1.shape == (batch, 1) and q2.shape == (batch, 1)
    assert jnp.allclose(q1, r1, atol=1e-5, rtol=1e-5)
    assert jnp.allclose(q2, r2, atol=1e-5, rtol=1e-5)

    print("KERNEL_OK")
</pallas_src>

<mosaic_0001>
module attributes {stable_mosaic.version = 11 : i64} {
  func.func @critic_kernel(%arg0: i32, %arg1: memref<128x16xf32, #tpu.memory_space<vmem>>, %arg2: memref<128x4xf32, #tpu.memory_space<vmem>>, %arg3: memref<16x64xf32, #tpu.memory_space<vmem>>, %arg4: memref<4x64xf32, #tpu.memory_space<vmem>>, %arg5: memref<1x64xf32, #tpu.memory_space<vmem>>, %arg6: memref<64x64xf32, #tpu.memory_space<vmem>>, %arg7: memref<1x64xf32, #tpu.memory_space<vmem>>, %arg8: memref<64x128xf32, #tpu.memory_space<vmem>>, %arg9: memref<1x128xf32, #tpu.memory_space<vmem>>, %arg10: memref<128x128xf32, #tpu.memory_space<vmem>>) attributes {dimension_semantics = [#tpu.dimension_semantics<parallel>], iteration_bounds = array<i64: 1>, scalar_prefetch = 0 : i64, scratch_operands = 0 : i64, tpu.core_type = #tpu.core_type<tc>, window_params = [{transform_indices = @transform_0, window_bounds = array<i64: 128, 16>}, {transform_indices = @transform_1, window_bounds = array<i64: 128, 4>}, {pipeline_mode = #tpu.pipeline_mode<synchronous>, transform_indices = @transform_2, window_bounds = array<i64: 16, 64>}, {pipeline_mode = #tpu.pipeline_mode<synchronous>, transform_indices = @transform_3, window_bounds = array<i64: 4, 64>}, {pipeline_mode = #tpu.pipeline_mode<synchronous>, transform_indices = @transform_4, window_bounds = array<i64: 1, 64>}, {pipeline_mode = #tpu.pipeline_mode<synchronous>, transform_indices = @transform_5, window_bounds = array<i64: 64, 64>}, {pipeline_mode = #tpu.pipeline_mode<synchronous>, transform_indices = @transform_6, window_bounds = array<i64: 1, 64>}, {pipeline_mode = #tpu.pipeline_mode<synchronous>, transform_indices = @transform_7, window_bounds = array<i64: 64, 128>}, {pipeline_mode = #tpu.pipeline_mode<synchronous>, transform_indices = @transform_8, window_bounds = array<i64: 1, 128>}, {transform_indices = @transform_9, window_bounds = array<i64: 128, 128>}]} {
    %c0 = arith.constant 0 : index
    %c0_0 = arith.constant 0 : index
    %0 = vector.load %arg1[%c0, %c0_0] : memref<128x16xf32, #tpu.memory_space<vmem>>, vector<128x16xf32>
    %c0_1 = arith.constant 0 : index
    %c0_2 = arith.constant 0 : index
    %1 = vector.load %arg3[%c0_1, %c0_2] : memref<16x64xf32, #tpu.memory_space<vmem>>, vector<16x64xf32>
    %cst = arith.constant dense<0.000000e+00> : vector<128x64xf32>
    %2 = tpu.matmul %0, %1, %cst {dimension_numbers = #tpu.dot_dimension_numbers<[1], [0], [0], [1], [0, 0, 1, 1], [], []>} : vector<128x16xf32>, vector<16x64xf32>, vector<128x64xf32> -> vector<128x64xf32>
    %c0_3 = arith.constant 0 : index
    %c0_4 = arith.constant 0 : index
    %3 = vector.load %arg2[%c0_3, %c0_4] : memref<128x4xf32, #tpu.memory_space<vmem>>, vector<128x4xf32>
    %c0_5 = arith.constant 0 : index
    %c0_6 = arith.constant 0 : index
    %4 = vector.load %arg4[%c0_5, %c0_6] : memref<4x64xf32, #tpu.memory_space<vmem>>, vector<4x64xf32>
    %cst_7 = arith.constant dense<0.000000e+00> : vector<128x64xf32>
    %5 = tpu.matmul %3, %4, %cst_7 {dimension_numbers = #tpu.dot_dimension_numbers<[1], [0], [0], [1], [0, 0, 1, 1], [], []>} : vector<128x4xf32>, vector<4x64xf32>, vector<128x64xf32> -> vector<128x64xf32>
    %6 = arith.addf %2, %5 : vector<128x64xf32>
    %c0_8 = arith.constant 0 : index
    %c0_9 = arith.constant 0 : index
    %7 = vector.load %arg5[%c0_8, %c0_9] : memref<1x64xf32, #tpu.memory_space<vmem>>, vector<1x64xf32>
    %8 = vector.broadcast %7 : vector<1x64xf32> to vector<128x64xf32>
    %9 = arith.addf %6, %8 : vector<128x64xf32>
    %cst_10 = arith.constant 0.000000e+00 : f32
    %10 = vector.broadcast %cst_10 : f32 to vector<128x64xf32>
    %11 = arith.maximumf %9, %10 : vector<128x64xf32>
    %c0_11 = arith.constant 0 : index
    %c0_12 = arith.constant 0 : index
    %12 = vector.load %arg6[%c0_11, %c0_12] : memref<64x64xf32, #tpu.memory_space<vmem>>, vector<64x64xf32>
    %cst_13 = arith.constant dense<0.000000e+00> : vector<128x64xf32>
    %13 = tpu.matmul %11, %12, %cst_13 {dimension_numbers = #tpu.dot_dimension_numbers<[1], [0], [0], [1], [0, 0, 1, 1], [], []>} : vector<128x64xf32>, vector<64x64xf32>, vector<128x64xf32> -> vector<128x64xf32>
    %c0_14 = arith.constant 0 : index
    %c0_15 = arith.constant 0 : index
    %14 = vector.load %arg7[%c0_14, %c0_15] : memref<1x64xf32, #tpu.memory_space<vmem>>, vector<1x64xf32>
    %15 = vector.broadcast %14 : vector<1x64xf32> to vector<128x64xf32>
    %16 = arith.addf %13, %15 : vector<128x64xf32>
    %cst_16 = arith.constant 0.000000e+00 : f32
    %17 = vector.broadcast %cst_16 : f32 to vector<128x64xf32>
    %18 = arith.maximumf %16, %17 : vector<128x64xf32>
    %c0_17 = arith.constant 0 : index
    %c0_18 = arith.constant 0 : index
    %19 = vector.load %arg8[%c0_17, %c0_18] : memref<64x128xf32, #tpu.memory_space<vmem>>, vector<64x128xf32>
    %cst_19 = arith.constant dense<0.000000e+00> : vector<128x128xf32>
    %20 = tpu.matmul %18, %19, %cst_19 {dimension_numbers = #tpu.dot_dimension_numbers<[1], [0], [0], [1], [0, 0, 1, 1], [], []>} : vector<128x64xf32>, vector<64x128xf32>, vector<128x128xf32> -> vector<128x128xf32>
    %c0_20 = arith.constant 0 : index
    %c0_21 = arith.constant 0 : index
    %21 = vector.load %arg9[%c0_20, %c0_21] : memref<1x128xf32, #tpu.memory_space<vmem>>, vector<1x128xf32>
    %22 = vector.broadcast %21 : vector<1x128xf32> to vector<128x128xf32>
    %23 = arith.addf %20, %22 : vector<128x128xf32>
    %c0_22 = arith.constant 0 : index
    %c0_23 = arith.constant 0 : index
    %24 = vector.load %arg10[%c0_22, %c0_23] : memref<128x128xf32, #tpu.memory_space<vmem>>, vector<128x128xf32>
    tpu.vector_store %arg10[%c0_22, %c0_23], %23 {strides = array<i32>} : memref<128x128xf32, #tpu.memory_space<vmem>>, vector<128x128xf32>,
    return
  }
  func.func @transform_0(%arg0: i32) -> (i32, i32) {
    %c0_i32 = arith.constant 0 : i32
    %c0_i32_0 = arith.constant 0 : i32
    return %arg0, %c0_i32 : i32, i32
  }
  func.func @transform_1(%arg0: i32) -> (i32, i32) {
    %c0_i32 = arith.constant 0 : i32
    %c0_i32_0 = arith.constant 0 : i32
    return %arg0, %c0_i32 : i32, i32
  }
  func.func @transform_2(%arg0: i32) -> (i32, i32) {
    %c0_i32 = arith.constant 0 : i32
    %c0_i32_0 = arith.constant 0 : i32
    %c0_i32_1 = arith.constant 0 : i32
    return %c0_i32, %c0_i32_0 : i32, i32
  }
  func.func @transform_3(%arg0: i32) -> (i32, i32) {
    %c0_i32 = arith.constant 0 : i32
    %c0_i32_0 = arith.constant 0 : i32
    %c0_i32_1 = arith.constant 0 : i32
    return %c0_i32, %c0_i32_0 : i32, i32
  }
  func.func @transform_4(%arg0: i32) -> (i32, i32) {
    %c0_i32 = arith.constant 0 : i32
    %c0_i32_0 = arith.constant 0 : i32
    %c0_i32_1 = arith.constant 0 : i32
    return %c0_i32, %c0_i32_0 : i32, i32
  }
  func.func @transform_5(%arg0: i32) -> (i32, i32) {
    %c0_i32 = arith.constant 0 : i32
    %c0_i32_0 = arith.constant 0 : i32
    %c0_i32_1 = arith.constant 0 : i32
    return %c0_i32, %c0_i32_0 : i32, i32
  }
  func.func @transform_6(%arg0: i32) -> (i32, i32) {
    %c0_i32 = arith.constant 0 : i32
    %c0_i32_0 = arith.constant 0 : i32
    %c0_i32_1 = arith.constant 0 : i32
    return %c0_i32, %c0_i32_0 : i32, i32
  }
  func.func @transform_7(%arg0: i32) -> (i32, i32) {
    %c0_i32 = arith.constant 0 : i32
    %c0_i32_0 = arith.constant 0 : i32
    %c0_i32_1 = arith.constant 0 : i32
    return %c0_i32, %c0_i32_0 : i32, i32
  }
  func.func @transform_8(%arg0: i32) -> (i32, i32) {
    %c0_i32 = arith.constant 0 : i32
    %c0_i32_0 = arith.constant 0 : i32
    %c0_i32_1 = arith.constant 0 : i32
    return %c0_i32, %c0_i32_0 : i32, i32
  }
  func.func @transform_9(%arg0: i32) -> (i32, i32) {
    %c0_i32 = arith.constant 0 : i32
    %c0_i32_0 = arith.constant 0 : i32
    return %arg0, %c0_i32 : i32, i32
  }
}

</mosaic_0001>

<bundles_post_ra>
// kernel: tpu_custom_call.1
= control target key start
LH: loop header
LB: loop body
LE: loop exit
PB: predicated region body
PF: predicated region fallthrough
CT: control target
= control target key end

     0   :  { %vm117_vm0 = vcmask 1043456   ;;  %vm68_vm1 = vcmask 31744   ;;  %s1645_s0 = inlined_call_operand.vmem [shape: f32[128,16], index: 0, kind: input, shape index: {}]   ;;  %s1646_s1 = inlined_call_operand.vmem [shape: f32[128,4], index: 1, kind: input, shape index: {}]   ;;  %s1647_s2 = inlined_call_operand.vmem [shape: f32[16,64], index: 2, kind: input, shape index: {}]   ;;  %s1648_s3 = inlined_call_operand.vmem [shape: f32[4,64], index: 3, kind: input, shape index: {}]   ;;  %s1649_s4 = inlined_call_operand.vmem [shape: f32[1,64], index: 4, kind: input, shape index: {}]   ;;  %s1650_s5 = inlined_call_operand.vmem [shape: f32[64,64], index: 5, kind: input, shape index: {}]   ;;  %s1651_s6 = inlined_call_operand.vmem [shape: f32[1,64], index: 6, kind: input, shape index: {}]   ;;  %s1652_s7 = inlined_call_operand.vmem [shape: f32[64,128], index: 7, kind: input, shape index: {}]   ;;  %s1653_s8 = inlined_call_operand.vmem [shape: f32[1,128], index: 8, kind: input, shape index: {}]   ;;  %s1654_s9 = inlined_call_operand.hbm [shape: f32[128,128], index: 9, kind: output, shape index: {}]  }
   0x1   :  { %v67_v0 = vld [vmem:[%s1648_s3] sm:$0xf]  ;;  %v52_v2 = vld [vmem:[%s1646_s1 + $0x8] sm:$0xff]  ;;  %v53_v5 = vld [vmem:[%s1646_s1 + $0x10] sm:$0xff] }
   0x2   :  { %v51_v1 = vld [vmem:[%s1646_s1] sm:$0xff]  ;;  %1115 = vmatprep.subr.msk.mxu0 %vm117_vm0, %v67_v0  ;;  %v50_v4 = vld [vmem:[%s1647_s2 + $0x8] sm:$0xff]  ;;  %v54_v7 = vld [vmem:[%s1646_s1 + $0x18] sm:$0xff] }
   0x3   :  { %1117 = vmatprep.mubr.msk.f32.mxu0 %vm68_vm1, %v51_v1  ;;  %v49_v3 = vld [vmem:[%s1647_s2] sm:$0xff]  ;;  %1116 = vmatpush3.msk.msra.mxu0 %vm117_vm0, %v67_v0  ;;  %v56_v9 = vld [vmem:[%s1646_s1 + $0x28] sm:$0xff]  ;;  %v57_v10 = vld [vmem:[%s1646_s1 + $0x30] sm:$0xff] }
   0x4   :  { %v1249_v6 = vpack.c.bf16 %v50_v4, %v49_v3  ;;  %1118 = vmatmul.mubr.msk.f32.vlgmr.msra.gmra.mrb[0].mxu0 %vm68_vm1, %v52_v2  ;;  %v55_v8 = vld [vmem:[%s1646_s1 + $0x20] sm:$0xff]  ;;  %v58_v12 = vld [vmem:[%s1646_s1 + $0x38] sm:$0xff]  ;;  %v500_v13 = vld [vmem:[%s1650_s5 + $0x8] sm:$0xff] }
   0x5   :  { %1120 = vmatprep.mubr.msk.f32.mxu0 %vm68_vm1, %v53_v5  ;;  %v499_v11 = vld [vmem:[%s1650_s5] sm:$0xff]  ;;  %v501_v16 = vld [vmem:[%s1650_s5 + $0x10] sm:$0xff]  ;;  %v502_v17 = vld [vmem:[%s1650_s5 + $0x18] sm:$0xff] }
   0x6   :  { %1250 = vmatprep.subr.bf16.mxu0 %v1249_v6  ;;  %v59_v14 = vld [vmem:[%s1646_s1 + $0x40] sm:$0xff]  ;;  %v1253_v15 = vpack.c.bf16 %v500_v13, %v499_v11 }
   0x7   :  { %1252 = vmatpush3.bf16.msra.mxu0 %v1249_v6 }
   0x8   :  { %1121 = vmatmul.mubr.msk.f32.gmra.mrb[2].mxu0 %vm68_vm1, %v54_v7 }
   0x9   :  { %1123 = vmatprep.mubr.msk.f32.mxu0 %vm68_vm1, %v55_v8 }
   0xc   :  { %1124 = vmatmul.mubr.msk.f32.gmra.mrb[4].mxu0 %vm68_vm1, %v56_v9 }
   0xd   :  { %1126 = vmatprep.mubr.msk.f32.mxu0 %vm68_vm1, %v57_v10 }
   0xe   :  { %14 = vsyncpa [#allocation3], 0  ;;  %1254 = vmatprep.subr.bf16.mxu0 %v1253_v15  ;;  %v60_v18 = vld [vmem:[%s1646_s1 + $0x48] sm:$0xff]  ;;  %v1257_v19 = vpack.c.bf16 %v502_v17, %v501_v16  ;;  %1285 = vmatprep.subr.bf16.mxu1 %v1253_v15  ;;  %v61_v20 = vld [vmem:[%s1646_s1 + $0x50] sm:$0xff]  ;;  %vm266_vm2 = vcmask 130048   ;;  %vm514_vm3 = vcmask 523264  }
   0xf   :  { %v503_v21 = vld [vmem:[%s1650_s5 + $0x20] sm:$0xff]  ;;  %v504_v22 = vld [vmem:[%s1650_s5 + $0x28] sm:$0xff]  ;;  %1289 = vmatpush3.bf16.msra.mxu1 %v1253_v15  ;;  %v62_v23 = vld [vmem:[%s1646_s1 + $0x58] sm:$0xff] }
  0x10   :  { %1127 = vmatmul.mubr.msk.f32.gmra.mrb[6].mxu0 %vm68_vm1, %v58_v12  ;;  %1286 = vmatprep.subr.bf16.mxu1 %v1257_v19  ;;  %v1261_v24 = vpack.c.bf16 %v504_v22, %v503_v21  ;;  %v63_v25 = vld [vmem:[%s1646_s1 + $0x60] sm:$0xff]  ;;  %v505_v26 = vld [vmem:[%s1650_s5 + $0x30] sm:$0xff]  ;;  %v506_v27 = vld [vmem:[%s1650_s5 + $0x38] sm:$0xff] }
  0x11   :  { %1129 = vmatprep.mubr.msk.f32.mxu0 %vm68_vm1, %v59_v14  ;;  %v64_v28 = vld [vmem:[%s1646_s1 + $0x68] sm:$0xff]  ;;  %v1265_v29 = vpack.c.bf16 %v506_v27, %v505_v26  ;;  %v65_v30 = vld [vmem:[%s1646_s1 + $0x70] sm:$0xff]  ;;  %v66_v31 = vld [vmem:[%s1646_s1 + $0x78] sm:$0xff] }
  0x12   :  { %v33_v32 = vld [vmem:[%s1645_s0] sm:$0xff]  ;;  %v34_v33 = vld [vmem:[%s1645_s0 + $0x8] sm:$0xff]  ;;  %v35_v34 = vld [vmem:[%s1645_s0 + $0x10] sm:$0xff] }
  0x13   :  { %1290 = vmatpush3.bf16.msra.mxu1 %v1257_v19  ;;  %v36_v35 = vld [vmem:[%s1645_s0 + $0x18] sm:$0xff]  ;;  %v37_v36 = vld [vmem:[%s1645_s0 + $0x20] sm:$0xff]  ;;  %v38_v37 = vld [vmem:[%s1645_s0 + $0x28] sm:$0xff] }
  0x14   :  { %1130 = vmatmul.mubr.msk.f32.gmra.mrb[8].mxu0 %vm68_vm1, %v60_v18  ;;  %1287 = vmatprep.subr.bf16.mxu1 %v1261_v24  ;;  %v39_v38 = vld [vmem:[%s1645_s0 + $0x30] sm:$0xff]  ;;  %v40_v39 = vld [vmem:[%s1645_s0 + $0x38] sm:$0xff]  ;;  %v41_v40 = vld [vmem:[%s1645_s0 + $0x40] sm:$0xff] }
  0x15   :  { %1132 = vmatprep.mubr.msk.f32.mxu0 %vm68_vm1, %v61_v20  ;;  %v42_v41 = vld [vmem:[%s1645_s0 + $0x48] sm:$0xff]  ;;  %v43_v42 = vld [vmem:[%s1645_s0 + $0x50] sm:$0xff]  ;;  %v44_v43 = vld [vmem:[%s1645_s0 + $0x58] sm:$0xff] }
  0x16   :  { %v45_v44 = vld [vmem:[%s1645_s0 + $0x60] sm:$0xff]  ;;  %v46_v45 = vld [vmem:[%s1645_s0 + $0x68] sm:$0xff]  ;;  %v47_v46 = vld [vmem:[%s1645_s0 + $0x70] sm:$0xff] }
  0x17   :  { %1291 = vmatpush3.bf16.msra.mxu1 %v1261_v24  ;;  %v48_v47 = vld [vmem:[%s1645_s0 + $0x78] sm:$0xff]  ;;  %v724_v48 = vld [vmem:[%s1652_s7] sm:$0xff]  ;;  %v725_v49 = vld [vmem:[%s1652_s7 + $0x8] sm:$0xff] }
  0x18   :  { %1133 = vmatmul.mubr.msk.f32.gmra.mrb[10].mxu0 %vm68_vm1, %v62_v23  ;;  %1288 = vmatprep.subr.bf16.mxu1 %v1265_v29  ;;  %v1269_v50 = vpack.c.bf16 %v725_v49, %v724_v48  ;;  %v1559_v51 = vld [vmem:[%s1649_s4] ss:$0 sm:$0xff]  ;;  %v726_v62 = vld [vmem:[%s1652_s7 + $0x10] sm:$0xff]  ;;  %v727_v63 = vld [vmem:[%s1652_s7 + $0x18] sm:$0xff] }
  0x19   :  { %1135 = vmatprep.mubr.msk.f32.mxu0 %vm68_vm1, %v63_v25  ;;  %v1273_v5 = vpack.c.bf16 %v727_v63, %v726_v62  ;;  %v728_v7 = vld [vmem:[%s1652_s7 + $0x20] sm:$0xff]  ;;  %v729_v8 = vld [vmem:[%s1652_s7 + $0x28] sm:$0xff] }
  0x1a   :  { %v1277_v14 = vpack.c.bf16 %v729_v8, %v728_v7 }
  0x1b   :  { %1292 = vmatpush3.bf16.msra.mxu1 %v1265_v29 }
  0x1c   :  { %1136 = vmatmul.mubr.msk.f32.gmra.mrb[12].mxu0 %vm68_vm1, %v64_v28  ;;  %1270 = vmatprep.subr.bf16.mxu1 %v1269_v50 }
  0x1d   :  { %1138 = vmatprep.mubr.msk.f32.mxu0 %vm68_vm1, %v65_v30 }
  0x20   :  { %1139 = vmatmul.mubr.msk.f32.gmra.mrb[14].mxu0 %vm68_vm1, %v66_v31 }
  0x21   :  { %1145 = vmatprep.mubr.msk.f32.mxu0 %vm266_vm2, %v33_v32 }
  0x24   :  { %1146 = vmatmul.mubr.msk.f32.vlgmr.msra.gmra.mrb[0].mxu0 %vm266_vm2, %v34_v33 }
  0x25   :  { %1148 = vmatprep.mubr.msk.f32.mxu0 %vm266_vm2, %v35_v34  ;;  %1256 = vmatpush3.bf16.msra.mxu0 %v1253_v15 }
  0x26   :  { %1258 = vmatprep.subr.bf16.mxu0 %v1257_v19 }
  0x28   :  { %1149 = vmatmul.mubr.msk.f32.gmra.mrb[2].mxu0 %vm266_vm2, %v36_v35 }
  0x29   :  { %1151 = vmatprep.mubr.msk.f32.mxu0 %vm266_vm2, %v37_v36  ;;  %1260 = vmatpush3.bf16.msra.mxu0 %v1257_v19 }
  0x2a   :  { %1262 = vmatprep.subr.bf16.mxu0 %v1261_v24 }
  0x2c   :  { %1152 = vmatmul.mubr.msk.f32.gmra.mrb[4].mxu0 %vm266_vm2, %v38_v37 }
  0x2d   :  { %1154 = vmatprep.mubr.msk.f32.mxu0 %vm266_vm2, %v39_v38  ;;  %1264 = vmatpush3.bf16.msra.mxu0 %v1261_v24 }
  0x2e   :  { %1266 = vmatprep.subr.bf16.mxu0 %v1265_v29 }
  0x30   :  { %1155 = vmatmul.mubr.msk.f32.gmra.mrb[6].mxu0 %vm266_vm2, %v40_v39 }
  0x31   :  { %1157 = vmatprep.mubr.msk.f32.mxu0 %vm266_vm2, %v41_v40  ;;  %1268 = vmatpush3.bf16.msra.mxu0 %v1265_v29 }
  0x34   :  { %1158 = vmatmul.mubr.msk.f32.gmra.mrb[8].mxu0 %vm266_vm2, %v42_v41 }
  0x35   :  { %1160 = vmatprep.mubr.msk.f32.mxu0 %vm266_vm2, %v43_v42  ;;  %v730_v42 = vld [vmem:[%s1652_s7 + $0x30] sm:$0xff] }
  0x38   :  { %1161 = vmatmul.mubr.msk.f32.gmra.mrb[10].mxu0 %vm266_vm2, %v44_v43  ;;  %v731_v43 = vld [vmem:[%s1652_s7 + $0x38] sm:$0xff] }
  0x39   :  { %1163 = vmatprep.mubr.msk.f32.mxu0 %vm266_vm2, %v45_v44  ;;  %v1281_v44 = vpack.c.bf16 %v731_v43, %v730_v42 }
  0x3c   :  { %1164 = vmatmul.mubr.msk.f32.gmra.mrb[12].mxu0 %vm266_vm2, %v46_v45  ;;  %v998_v45 = vld [vmem:[%s1651_s6] ss:$0 sm:$0xff] }
  0x3d   :  { %1166 = vmatprep.mubr.msk.f32.mxu0 %vm266_vm2, %v47_v46 }
  0x40   :  { %1167 = vmatmul.mubr.msk.f32.gmra.mrb[14].mxu0 %vm266_vm2, %v48_v47 }
  0xf7   :  { %v1147_v52 = vpop.f32.mrb[0].mxu0 }
  0xf8   :  { %v468_v53 = vadd.f32 %v1147_v52, %v1559_v51  ;;  %v381_v54 = vpop.f32.mrb[1].mxu0 }
  0xf9   :  { %v467_v55 = vadd.f32 %v1559_v51, %v381_v54 }
  0xfa   :  { %v484_v58 = vmax.f32 %v468_v53, 0.0 }
  0xfb   :  { %v483_v56 = vmax.f32 %v467_v55, 0.0  ;;  %v1150_v57 = vpop.f32.mrb[2].mxu0 }
  0xfc   :  { %v470_v59 = vadd.f32 %v1150_v57, %v1559_v51  ;;  %v391_v60 = vpop.f32.mrb[3].mxu0 }
  0xfd   :  { %v469_v61 = vadd.f32 %v1559_v51, %v391_v60  ;;  %1185 = vmatprep.mubr.msk.f32.mxu0 %vm514_vm3, %v483_v56 }
  0xfe   :  { %1186 = vmatmul.mubr.msk.f32.vlgmr.msra.gmra.mrb[16].mxu0 %vm514_vm3, %v484_v58  ;;  %v486_v2 = vmax.f32 %v470_v59, 0.0 }
  0xff   :  { %v485_v0 = vmax.f32 %v469_v61, 0.0  ;;  %v1153_v1 = vpop.f32.mrb[4].mxu0 }
 0x100   :  { %v472_v3 = vadd.f32 %v1153_v1, %v1559_v51  ;;  %v401_v4 = vpop.f32.mrb[5].mxu0 }
 0x101   :  { %v471_v6 = vadd.f32 %v1559_v51, %v401_v4  ;;  %1188 = vmatprep.mubr.msk.f32.mxu1 %vm514_vm3, %v485_v0 }
 0x102   :  { %1189 = vmatmul.mubr.msk.f32.vlgmr.msra.gmra.mrb[0].mxu1 %vm514_vm3, %v486_v2  ;;  %v488_v11 = vmax.f32 %v472_v3, 0.0 }
 0x103   :  { %v487_v9 = vmax.f32 %v471_v6, 0.0  ;;  %v1156_v10 = vpop.f32.mrb[6].mxu0  ;;  %1272 = vmatpush3.bf16.msra.mxu1 %v1269_v50 }
 0x104   :  { %v474_v12 = vadd.f32 %v1156_v10, %v1559_v51  ;;  %v411_v13 = vpop.f32.mrb[7].mxu0  ;;  %1274 = vmatprep.subr.bf16.mxu1 %v1273_v5 }
 0x105   :  { %v473_v15 = vadd.f32 %v1559_v51, %v411_v13  ;;  %1191 = vmatprep.mubr.msk.f32.mxu1 %vm514_vm3, %v487_v9 }
 0x106   :  { %1192 = vmatmul.mubr.msk.f32.gmra.mrb[2].mxu1 %vm514_vm3, %v488_v11  ;;  %v490_v18 = vmax.f32 %v474_v12, 0.0 }
 0x107   :  { %v489_v16 = vmax.f32 %v473_v15, 0.0  ;;  %v1159_v17 = vpop.f32.mrb[8].mxu0  ;;  %1276 = vmatpush3.bf16.msra.mxu1 %v1273_v5 }
 0x108   :  { %v476_v19 = vadd.f32 %v1159_v17, %v1559_v51  ;;  %v421_v20 = vpop.f32.mrb[9].mxu0  ;;  %1278 = vmatprep.subr.bf16.mxu1 %v1277_v14 }
 0x109   :  { %v475_v21 = vadd.f32 %v1559_v51, %v421_v20  ;;  %1194 = vmatprep.mubr.msk.f32.mxu1 %vm514_vm3, %v489_v16 }
 0x10a   :  { %1195 = vmatmul.mubr.msk.f32.gmra.mrb[4].mxu1 %vm514_vm3, %v490_v18  ;;  %v492_v24 = vmax.f32 %v476_v19, 0.0 }
 0x10b   :  { %v491_v22 = vmax.f32 %v475_v21, 0.0  ;;  %v1162_v23 = vpop.f32.mrb[10].mxu0  ;;  %1280 = vmatpush3.bf16.msra.mxu1 %v1277_v14 }
 0x10c   :  { %v478_v25 = vadd.f32 %v1162_v23, %v1559_v51  ;;  %v431_v26 = vpop.f32.mrb[11].mxu0  ;;  %1282 = vmatprep.subr.bf16.mxu1 %v1281_v44 }
 0x10d   :  { %v477_v27 = vadd.f32 %v1559_v51, %v431_v26  ;;  %1197 = vmatprep.mubr.msk.f32.mxu1 %vm514_vm3, %v491_v22 }
 0x10e   :  { %1198 = vmatmul.mubr.msk.f32.gmra.mrb[6].mxu1 %vm514_vm3, %v492_v24  ;;  %v494_v30 = vmax.f32 %v478_v25, 0.0 }
 0x10f   :  { %v493_v28 = vmax.f32 %v477_v27, 0.0  ;;  %v1165_v29 = vpop.f32.mrb[12].mxu0  ;;  %1284 = vmatpush3.bf16.msra.mxu1 %v1281_v44 }
 0x110   :  { %v480_v31 = vadd.f32 %v1165_v29, %v1559_v51  ;;  %v441_v32 = vpop.f32.mrb[13].mxu0 }
 0x111   :  { %v479_v33 = vadd.f32 %v1559_v51, %v441_v32  ;;  %1200 = vmatprep.mubr.msk.f32.mxu1 %vm514_vm3, %v493_v28 }
 0x112   :  { %1201 = vmatmul.mubr.msk.f32.gmra.mrb[8].mxu1 %vm514_vm3, %v494_v30  ;;  %v496_v36 = vmax.f32 %v480_v31, 0.0  ;;  %v1015_v30 = vld [vmem:[%s1653_s8] ss:$0 sm:$0xff]  ;;  %s1336_s8 = smov [#allocation2]  }
 0x113   :  { %v495_v34 = vmax.f32 %v479_v33, 0.0  ;;  %v1168_v35 = vpop.f32.mrb[14].mxu0  ;;  %s953_s16 = sshll.u32 %s1336_s8, 4  ;;  %s954_s16 = int_to_ptr.vmem [resolvable:$true] %s953_s16 }
 0x114   :  { %v482_v37 = vadd.f32 %v1168_v35, %v1559_v51  ;;  %v451_v38 = vpop.f32.mrb[15].mxu0  ;;  %s1312_s17 = scalar_lea.vmem %s954_s16, 2048  ;;  %p1317_p1 = scmp.lt.s32.totalorder %s954_s16, %s954_s16 }
 0x115   :  { %v481_v39 = vadd.f32 %v1559_v51, %v451_v38  ;;  %1203 = vmatprep.mubr.msk.f32.mxu1 %vm514_vm3, %v495_v34  ;;  %p1313_p0 = scmp.ne.s32.totalorder %s954_s16, %s1312_s17  ;;  %p1318_p2 = scmp.lt.s32.totalorder %s1312_s17, %s1312_s17 }
 0x116   :  { %1204 = vmatmul.mubr.msk.f32.gmra.mrb[10].mxu1 %vm514_vm3, %v496_v36  ;;  %v498_v41 = vmax.f32 %v482_v37, 0.0 }
 0x117   :  { %v497_v40 = vmax.f32 %v481_v39, 0.0  ;;  %p1319_p3 = por %p1318_p2, %p1317_p1 }
 0x119   :  { %1206 = vmatprep.mubr.msk.f32.mxu1 %vm514_vm3, %v497_v40  ;;  %p1320_p4 = pnand %p1319_p3, %p1313_p0 }
 0x11a   :  { %1207 = vmatmul.mubr.msk.f32.gmra.mrb[12].mxu1 %vm514_vm3, %v498_v41 }
 0x1d1   :  { %v1187_v46 = vpop.f32.mrb[16].mxu0 }
 0x1d2   :  { %v635_v47 = vadd.f32 %v1187_v46, %v998_v45  ;;  %v629_v48 = vpop.f32.mrb[17].mxu0 }
 0x1d3   :  { %v630_v49 = vadd.f32 %v998_v45, %v629_v48 }
 0x1d4   :  { %v709_v52 = vmax.f32 %v635_v47, 0.0 }
 0x1d5   :  { %v708_v50 = vmax.f32 %v630_v49, 0.0  ;;  %v1190_v51 = vpop.f32.mrb[0].mxu1 }
 0x1d6   :  { %v645_v53 = vadd.f32 %v1190_v51, %v998_v45  ;;  %v639_v54 = vpop.f32.mrb[1].mxu1 }
 0x1d7   :  { %v640_v55 = vadd.f32 %v998_v45, %v639_v54  ;;  %1225 = vmatprep.mubr.msk.f32.mxu1 %vm514_vm3, %v708_v50 }
 0x1d8   :  { %1226 = vmatmul.mubr.msk.f32.vlgmr.msra.gmra.mrb[14].mxu1 %vm514_vm3, %v709_v52  ;;  %v711_v58 = vmax.f32 %v645_v53, 0.0 }
 0x1d9   :  { %v710_v56 = vmax.f32 %v640_v55, 0.0  ;;  %v1193_v57 = vpop.f32.mrb[2].mxu1 }
 0x1da   :  { %v655_v59 = vadd.f32 %v1193_v57, %v998_v45  ;;  %v649_v60 = vpop.f32.mrb[3].mxu1 }
 0x1db   :  { %v650_v61 = vadd.f32 %v998_v45, %v649_v60  ;;  %1228 = vmatprep.mubr.msk.f32.mxu1 %vm514_vm3, %v710_v56 }
 0x1dc   :  { %1229 = vmatmul.mubr.msk.f32.gmra.mrb[16].mxu1 %vm514_vm3, %v711_v58  ;;  %v713_v0 = vmax.f32 %v655_v59, 0.0 }
 0x1dd   :  { %v712_v62 = vmax.f32 %v650_v61, 0.0  ;;  %v1196_v63 = vpop.f32.mrb[4].mxu1 }
 0x1de   :  { %v665_v1 = vadd.f32 %v1196_v63, %v998_v45  ;;  %v659_v2 = vpop.f32.mrb[5].mxu1 }
 0x1df   :  { %v660_v3 = vadd.f32 %v998_v45, %v659_v2  ;;  %1231 = vmatprep.mubr.msk.f32.mxu1 %vm514_vm3, %v712_v62 }
 0x1e0   :  { %1232 = vmatmul.mubr.msk.f32.gmra.mrb[18].mxu1 %vm514_vm3, %v713_v0  ;;  %v715_v6 = vmax.f32 %v665_v1, 0.0 }
 0x1e1   :  { %v714_v4 = vmax.f32 %v660_v3, 0.0  ;;  %v1199_v5 = vpop.f32.mrb[6].mxu1 }
 0x1e2   :  { %v675_v7 = vadd.f32 %v1199_v5, %v998_v45  ;;  %v669_v8 = vpop.f32.mrb[7].mxu1 }
 0x1e3   :  { %v670_v9 = vadd.f32 %v998_v45, %v669_v8  ;;  %1234 = vmatprep.mubr.msk.f32.mxu1 %vm514_vm3, %v714_v4 }
 0x1e4   :  { %1235 = vmatmul.mubr.msk.f32.gmra.mrb[20].mxu1 %vm514_vm3, %v715_v6  ;;  %v717_v12 = vmax.f32 %v675_v7, 0.0 }
 0x1e5   :  { %v716_v10 = vmax.f32 %v670_v9, 0.0  ;;  %v1202_v11 = vpop.f32.mrb[8].mxu1 }
 0x1e6   :  { %v685_v13 = vadd.f32 %v1202_v11, %v998_v45  ;;  %v679_v14 = vpop.f32.mrb[9].mxu1 }
 0x1e7   :  { %v680_v15 = vadd.f32 %v998_v45, %v679_v14  ;;  %1237 = vmatprep.mubr.msk.f32.mxu1 %vm514_vm3, %v716_v10 }
 0x1e8   :  { %1238 = vmatmul.mubr.msk.f32.gmra.mrb[22].mxu1 %vm514_vm3, %v717_v12  ;;  %v719_v18 = vmax.f32 %v685_v13, 0.0 }
 0x1e9   :  { %v718_v16 = vmax.f32 %v680_v15, 0.0  ;;  %v1205_v17 = vpop.f32.mrb[10].mxu1 }
 0x1ea   :  { %v695_v19 = vadd.f32 %v1205_v17, %v998_v45  ;;  %v689_v20 = vpop.f32.mrb[11].mxu1 }
 0x1eb   :  { %v690_v21 = vadd.f32 %v998_v45, %v689_v20  ;;  %1240 = vmatprep.mubr.msk.f32.mxu1 %vm514_vm3, %v718_v16 }
 0x1ec   :  { %1241 = vmatmul.mubr.msk.f32.gmra.mrb[24].mxu1 %vm514_vm3, %v719_v18  ;;  %v721_v24 = vmax.f32 %v695_v19, 0.0 }
 0x1ed   :  { %v720_v22 = vmax.f32 %v690_v21, 0.0  ;;  %v1208_v23 = vpop.f32.mrb[12].mxu1 }
 0x1ee   :  { %v705_v25 = vadd.f32 %v1208_v23, %v998_v45  ;;  %v699_v26 = vpop.f32.mrb[13].mxu1 }
 0x1ef   :  { %v700_v27 = vadd.f32 %v998_v45, %v699_v26  ;;  %1243 = vmatprep.mubr.msk.f32.mxu1 %vm514_vm3, %v720_v22 }
 0x1f0   :  { %1244 = vmatmul.mubr.msk.f32.gmra.mrb[26].mxu1 %vm514_vm3, %v721_v24  ;;  %v723_v29 = vmax.f32 %v705_v25, 0.0 }
 0x1f1   :  { %v722_v28 = vmax.f32 %v700_v27, 0.0 }
 0x1f3   :  { %1246 = vmatprep.mubr.msk.f32.mxu1 %vm514_vm3, %v722_v28 }
 0x1f4   :  { %1247 = vmatmul.mubr.msk.f32.gmra.mrb[28].mxu1 %vm514_vm3, %v723_v29 }
 0x2ab   :  { %v1227_v31 = vpop.f32.mrb[14].mxu1 }
 0x2ac   :  { %v859_v32 = vadd.f32 %v1227_v31, %v1015_v30  ;;  %v853_v33 = vpop.f32.mrb[15].mxu1 }
 0x2ad   :  { %v854_v34 = vadd.f32 %v1015_v30, %v853_v33 }
 0x2ae   :  { %933 = vst [vmem:[#allocation2 + $0x8] sm:$0xff] %v859_v32 }
 0x2af   :  { %932 = vst [vmem:[#allocation2] sm:$0xff] %v854_v34  ;;  %v1230_v35 = vpop.f32.mrb[16].mxu1 }
 0x2b0   :  { %v869_v36 = vadd.f32 %v1230_v35, %v1015_v30  ;;  %v863_v37 = vpop.f32.mrb[17].mxu1 }
 0x2b1   :  { %v864_v38 = vadd.f32 %v1015_v30, %v863_v37 }
 0x2b2   :  { %935 = vst [vmem:[#allocation2 + $0x18] sm:$0xff] %v869_v36 }
 0x2b3   :  { %934 = vst [vmem:[#allocation2 + $0x10] sm:$0xff] %v864_v38  ;;  %v1233_v39 = vpop.f32.mrb[18].mxu1 }
 0x2b4   :  { %v879_v40 = vadd.f32 %v1233_v39, %v1015_v30  ;;  %v873_v41 = vpop.f32.mrb[19].mxu1 }
 0x2b5   :  { %v874_v42 = vadd.f32 %v1015_v30, %v873_v41 }
 0x2b6   :  { %937 = vst [vmem:[#allocation2 + $0x28] sm:$0xff] %v879_v40 }
 0x2b7   :  { %936 = vst [vmem:[#allocation2 + $0x20] sm:$0xff] %v874_v42  ;;  %v1236_v43 = vpop.f32.mrb[20].mxu1 }
 0x2b8   :  { %v889_v44 = vadd.f32 %v1236_v43, %v1015_v30  ;;  %v883_v45 = vpop.f32.mrb[21].mxu1 }
 0x2b9   :  { %v884_v46 = vadd.f32 %v1015_v30, %v883_v45 }
 0x2ba   :  { %939 = vst [vmem:[#allocation2 + $0x38] sm:$0xff] %v889_v44 }
 0x2bb   :  { %938 = vst [vmem:[#allocation2 + $0x30] sm:$0xff] %v884_v46  ;;  %v1239_v47 = vpop.f32.mrb[22].mxu1 }
 0x2bc   :  { %v899_v48 = vadd.f32 %v1239_v47, %v1015_v30  ;;  %v893_v49 = vpop.f32.mrb[23].mxu1 }
 0x2bd   :  { %v894_v50 = vadd.f32 %v1015_v30, %v893_v49 }
 0x2be   :  { %941 = vst [vmem:[#allocation2 + $0x48] sm:$0xff] %v899_v48 }
 0x2bf   :  { %940 = vst [vmem:[#allocation2 + $0x40] sm:$0xff] %v894_v50  ;;  %v1242_v51 = vpop.f32.mrb[24].mxu1 }
 0x2c0   :  { %v909_v52 = vadd.f32 %v1242_v51, %v1015_v30  ;;  %v903_v53 = vpop.f32.mrb[25].mxu1 }
 0x2c1   :  { %v904_v54 = vadd.f32 %v1015_v30, %v903_v53 }
 0x2c2   :  { %943 = vst [vmem:[#allocation2 + $0x58] sm:$0xff] %v909_v52 }
 0x2c3   :  { %942 = vst [vmem:[#allocation2 + $0x50] sm:$0xff] %v904_v54  ;;  %v1245_v55 = vpop.f32.mrb[26].mxu1 }
 0x2c4   :  { %v919_v56 = vadd.f32 %v1245_v55, %v1015_v30  ;;  %v913_v57 = vpop.f32.mrb[27].mxu1 }
 0x2c5   :  { %v914_v58 = vadd.f32 %v1015_v30, %v913_v57 }
 0x2c6   :  { %945 = vst [vmem:[#allocation2 + $0x68] sm:$0xff] %v919_v56 }
 0x2c7   :  { %944 = vst [vmem:[#allocation2 + $0x60] sm:$0xff] %v914_v58  ;;  %v1248_v59 = vpop.f32.mrb[28].mxu1 }
 0x2c8   :  { %v929_v60 = vadd.f32 %v1248_v59, %v1015_v30  ;;  %v923_v61 = vpop.f32.mrb[29].mxu1 }
 0x2c9   :  { %v924_v62 = vadd.f32 %v1015_v30, %v923_v61 }
 0x2ca   :  { %947 = vst [vmem:[#allocation2 + $0x78] sm:$0xff] %v929_v60 }
 0x2cb   :  { %946 = vst [vmem:[#allocation2 + $0x70] sm:$0xff] %v924_v62 }
 0x2cc   :  { %1323 = shalt.err (!%p1320_p4)
}
 0x2cd   :  { %s1324_s19 = scalar_lea.hbm %s1654_s9, 2048 }
 0x2ce   :  { %p1325_p5 = scmp.ne.s32.totalorder %s1654_s9, %s1324_s19  ;;  %p1328_p6 = scmp.lt.u32.totalorder %s1324_s19, %s1654_s9 }
 0x2d0   :  { %p1330_p7 = pnand %p1328_p6, %p1325_p5 }
 0x2d2   :  { %1333 = shalt.err (!%p1330_p7)
}
 0x2d3   :  { %s1337_s23 = smov 128   ;;  %s1338_s2 = smov 8  }
 0x2d4   :  { %959 = dma.vmem_to_hbm [thread:$0]  %s954_s16, 2048, %s1654_s9, [#allocation3], %s1337_s23, %s1337_s23, %s1338_s2  }
 0x2d5   :  { %1334 = dma.done.wait [#allocation3], 2048  }
 0x2d6   :  { %1335 = vsyncadd [#allocation3], 4294965248 }
 0x2d7   :  { %963 = vsyncpa [#allocation3], 1 }

</bundles_post_ra>
